<compile_context>
chip_gen: v6e
topology: v6e:2x2x1
jax: 0.10.0
libtpu: 0.0.40
codegen_flags: <defaults>
</compile_context>

<pallas_src>
import jax
import jax.numpy as jnp
from jax.experimental import pallas as pl
from jax.experimental.pallas import tpu as pltpu

_BIG = 1e30        # "infinite" distance for masked / already-selected entries
_VALID_MAX = 1e29  # anything >= this counts as masked / exhausted


# ---------------------------------------------------------------------------
# Helpers
# ---------------------------------------------------------------------------
def _round_up(x, m):
    return ((x + m - 1) // m) * m


def _tile_bytes(rows, cols, itemsize=4):
    # VMEM footprint of a 2-D block after (8, 128) layout padding.
    return (_round_up(max(int(rows), 1), 8)
            * _round_up(max(int(cols), 1), 128) * int(itemsize))


def _vmem_target_bytes():
    # Generation-aware usable-VMEM target (~48 MiB on v7x, ~96 MiB on v5e/v6e).
    cap = 128 * 1024 * 1024
    try:
        cap = int(getattr(pltpu.get_tpu_info(), "vmem_capacity_bytes", cap))
    except Exception:
        pass
    return int(min(cap * 3 // 4, 100 * 1024 * 1024))


def _pick_tile(nt, requested, per_row_bytes, budget_bytes):
    nt_pad8 = _round_up(max(nt, 1), 8)
    t = budget_bytes // max(per_row_bytes, 1) if budget_bytes > 0 else 8
    t = min(int(t), int(requested), nt_pad8)
    t = max(8, (t // 8) * 8)
    # v7x megacore: keep >= 2 grid programs whenever the problem allows, so
    # dimension_semantics=("parallel",) can shard across both TensorCores.
    if nt_pad8 >= 16 and -(-nt_pad8 // t) < 2:
        t = min(t, _round_up(-(-nt_pad8 // 2), 8))
    return t


# ---------------------------------------------------------------------------
# Fused kernel: knn_interpolate + (concat) + ResMLP + outer ReLU
# ---------------------------------------------------------------------------
def _make_fp_fused_kernel(k, has_x_target, mxu_dtype):
    def kernel(*refs):
        refs = list(refs)
        out_ref = refs.pop()
        it = iter(refs)
        lhs_ref = next(it)                               # (T, 5)   f32  (tiled)
        bt_ref = next(it)                                # (T, 1)   i32  (tiled)
        x_t_ref = next(it) if has_x_target else None     # (T, Ft)  f32  (tiled)
        rhs_ref = next(it)                               # (5, Ns)  f32  (resident)
        bs_ref = next(it)                                # (1, Ns)  i32  (resident)
        x_s_ref = next(it)                               # (Ns, Fs)      (resident)
        w1i_ref = next(it)                               # (Fs, H)
        w1t_ref = next(it) if has_x_target else None     # (Ft, H)
        b1_ref = next(it)                                # (1, H)   f32
        w2_ref = next(it)                                # (H, Cp)
        b2_ref = next(it)                                # (1, Cp)  f32 (b2 + bs folded)
        wsi_ref = next(it)                               # (Fs, Cp)
        wst_ref = next(it) if has_x_target else None     # (Ft, Cp)

        # ---- knn_interpolate: squared distances via ONE augmented MXU matmul ----
        # lhs = [pos_t, |pos_t|^2, 1], rhs = [-2*pos_s^T ; 1 ; |pos_s|^2]
        d2 = jnp.dot(lhs_ref[...], rhs_ref[...], preferred_element_type=jnp.float32)
        d2 = jnp.where(bt_ref[...] == bs_ref[...], jnp.maximum(d2, 0.0), _BIG)

        tsz = d2.shape[0]
        w_sel = jnp.zeros_like(d2)                       # weighted selector (T, Ns)
        w_sum = jnp.zeros((tsz, 1), jnp.float32)

        # k nearest neighbours, inverse-squared-distance weights
        # (torch_geometric knn_interpolate: w = 1 / clamp(d^2, 1e-16)).
        # Selections across iterations are disjoint (selected entries -> _BIG);
        # exhausted rows (m >= _VALID_MAX) select nothing and add zero weight.
        # Exact duplicate source points collapse into one iteration (never occurs
        # for float coordinates in practice).
        for _ in range(k):
            m = jnp.min(d2, axis=1, keepdims=True)                        # (T,1) XLU
            valid = m < _VALID_MAX                                        # (T,1)
            sel = d2 <= jnp.where(valid, m, -1.0)                         # (T,Ns)
            w = jnp.where(valid,
                          pl.reciprocal(jnp.maximum(m, 1e-16), approx=True),  # EUP
                          0.0)                                            # (T,1)
            w_sel = jnp.where(sel, w, w_sel)
            w_sum = w_sum + w
            d2 = jnp.where(sel, _BIG, d2)

        # Hoisted gather matmul: one W @ x_source gathers + weights all k neighbours.
        interp = jnp.dot(w_sel.astype(mxu_dtype), x_s_ref[...],
                         preferred_element_type=jnp.float32)              # (T, Fs)
        interp = interp * pl.reciprocal(jnp.maximum(w_sum, 1e-30), approx=False)

        # ---- ResMLP + outer ReLU (concat folded via row-split weights) ----
        xi = interp.astype(mxu_dtype)
        h = jnp.dot(xi, w1i_ref[...], preferred_element_type=jnp.float32)
        s = jnp.dot(xi, wsi_ref[...], preferred_element_type=jnp.float32)
        if has_x_target:
            xt = x_t_ref[...].astype(mxu_dtype)
            h = h + jnp.dot(xt, w1t_ref[...], preferred_element_type=jnp.float32)
            s = s + jnp.dot(xt, wst_ref[...], preferred_element_type=jnp.float32)
        h = jnp.maximum(h + b1_ref[...], 0.0)
        y = jnp.dot(h.astype(mxu_dtype), w2_ref[...],
                    preferred_element_type=jnp.float32) + b2_ref[...]

        # Single lane-dense full-width store (c_out padded to x128 in the wrapper).
        out_ref[...] = jnp.maximum(y + s, 0.0).astype(out_ref.dtype)

    return kernel


# ---------------------------------------------------------------------------
# Wrapper: prep / tiling / weight splitting + pallas_call
# ---------------------------------------------------------------------------
def fp_module_forward(params, k, x_target, pos_target, batch_target,
                      x_source, pos_source, batch_source, *,
                      tile_nt=512, mxu_dtype=jnp.float32):
    f32 = jnp.float32
    nt = pos_target.shape[0]
    ns = pos_source.shape[0]
    has_x_target = x_target is not None
    ft = x_target.shape[1] if has_x_target else 0
    fs = x_source.shape[1]
    c_in = ft + fs
    c_hidden = params["w1"].shape[1]
    c_out = params["w2"].shape[1]
    c_out_pad = _round_up(c_out, 128)     # lane-dense output store

    # ---- source-side prep (once, outside the kernel) ----
    pos_s = pos_source.astype(f32)
    rhs_aug = jnp.concatenate(
        [(-2.0) * pos_s.T,                                  # (3, Ns)
         jnp.ones((1, ns), f32),                            # picks up |pos_t|^2
         jnp.sum(pos_s * pos_s, axis=1)[None, :]],          # (1, Ns)  |pos_s|^2
        axis=0)                                              # (5, Ns)
    bs2d = batch_source.astype(jnp.int32)[None, :]           # (1, Ns)
    x_s = x_source.astype(mxu_dtype)                         # (Ns, Fs)

    # ---- weights: row-split (fold the concat), column-pad to c_out_pad ----
    w1 = params["w1"].astype(mxu_dtype)
    b1 = params["b1"].astype(f32)
    if has_x_target:
        w1t, w1i = w1[:ft], w1[ft:]
    else:
        w1t, w1i = None, w1
    w2p = jnp.pad(params["w2"].astype(mxu_dtype), ((0, 0), (0, c_out_pad - c_out)))
    if "ws" in params:
        ws = params["ws"].astype(mxu_dtype)
        b2_eff = params["b2"] + params["bs"]                  # outer ReLU sees b2 + bs
    else:
        # nn.Identity shortcut: eye-block linear shortcut (negligible MXU work) so the
        # epilogue is one full-width lane-dense store, not masked sub-128-lane stores.
        ws = jnp.eye(c_in, c_out, dtype=mxu_dtype)
        b2_eff = params["b2"]
    b2p = jnp.pad(b2_eff.astype(f32), ((0, 0), (0, c_out_pad - c_out)))
    wsp = jnp.pad(ws, ((0, 0), (0, c_out_pad - c_out)))
    if has_x_target:
        wst, wsi = wsp[:ft], wsp[ft:]
    else:
        wst, wsi = None, wsp

    # ---- VMEM-aware tile sizing (resident arrays are double-buffered by default) ----
    resident_arrays = [rhs_aug, bs2d, x_s, w1i, b1, w2p, b2p, wsi]
    if has_x_target:
        resident_arrays += [w1t, wst]
    resident_bytes = 2 * sum(_tile_bytes(a.shape[0], a.shape[1], a.dtype.itemsize)
                             for a in resident_arrays)
    ns_lanes = _round_up(ns, 128)
    io_per_row = 2 * 4 * (128 + 128 + (_round_up(ft, 128) if ft else 0) + c_out_pad)
    temps_per_row = 6 * ns_lanes * 4      # live (T, Ns) temporaries in the k loop
    per_row = io_per_row + temps_per_row
    vmem_target = _vmem_target_bytes()
    headroom = 2 * 1024 * 1024
    tile = _pick_tile(nt, tile_nt, per_row, vmem_target - resident_bytes - headroom)
    vmem_limit = int(min(max(resident_bytes + tile * per_row + headroom,
                             32 * 1024 * 1024), vmem_target))
    # TODO(synk): if resident_bytes alone approaches vmem_target (huge Ns), switch the
    #             source-side arrays to memory_space=pl.ANY and chunk Ns in-kernel.

    # ---- target-side prep: pad rows, build augmented LHS ----
    nt_pad = _round_up(nt, tile)
    pad = nt_pad - nt
    pos_t = pos_target.astype(f32)
    lhs_t = jnp.concatenate(
        [pos_t, jnp.sum(pos_t * pos_t, axis=1, keepdims=True), jnp.ones((nt, 1), f32)],
        axis=1)                                               # (Nt, 5)
    lhs_t = jnp.pad(lhs_t, ((0, pad), (0, 0)))
    bt2d = jnp.pad(batch_target.astype(jnp.int32), (0, pad),
                   constant_values=-1)[:, None]               # padded rows never match
    if has_x_target:
        x_t = jnp.pad(x_target.astype(f32), ((0, pad), (0, 0)))

    # ---- specs / args ----
    def tiled(cols):
        return pl.BlockSpec((tile, cols), lambda i: (i, 0))

    def resident(arr):
        # Constant index_map: DMA'd once, stays VMEM-resident across the grid.
        return pl.BlockSpec(arr.shape, lambda i: (0, 0))

    args, specs = [], []
    args += [lhs_t, bt2d]
    specs += [tiled(5), tiled(1)]
    if has_x_target:
        args.append(x_t)
        specs.append(tiled(ft))
    for a in (rhs_aug, bs2d, x_s, w1i):
        args.append(a)
        specs.append(resident(a))
    if has_x_target:
        args.append(w1t)
        specs.append(resident(w1t))
    for a in (b1, w2p, b2p, wsi):
        args.append(a)
        specs.append(resident(a))
    if has_x_target:
        args.append(wst)
        specs.append(resident(wst))

    flops = int(2 * nt_pad * ns * (5 + fs)
                + 2 * nt_pad * (c_in * c_hidden + c_hidden * c_out_pad + c_in * c_out_pad))
    bytes_accessed = int(sum(int(a.size) * int(a.dtype.itemsize) for a in args)
                         + nt_pad * c_out_pad * 4)
    cost = pl.CostEstimate(flops=flops, transcendentals=int(nt_pad * (k + 1)),
                           bytes_accessed=bytes_accessed)

    kernel = _make_fp_fused_kernel(k=k, has_x_target=has_x_target, mxu_dtype=mxu_dtype)
    out = pl.pallas_call(
        kernel,
        out_shape=jax.ShapeDtypeStruct((nt_pad, c_out_pad), jnp.float32),
        grid=(nt_pad // tile,),
        in_specs=specs,
        out_specs=pl.BlockSpec((tile, c_out_pad), lambda i: (i, 0)),
        compiler_params=pltpu.CompilerParams(
            dimension_semantics=("parallel",),        # 2-TC sharding on v7x
            vmem_limit_bytes=vmem_limit,
        ),
        cost_estimate=cost,
    )(*args)
    return out[:nt, :c_out]


# ---------------------------------------------------------------------------
# Deterministic parameter init (PyTorch nn.Linear-style uniform)
# ---------------------------------------------------------------------------
def _init_linear(key, fan_in, fan_out):
    kw, kb = jax.random.split(key)
    bound = 1.0 / float(fan_in) ** 0.5
    # stored as (in, out) so kernels do y = x @ W + b
    w = jax.random.uniform(kw, (fan_in, fan_out), jnp.float32, -bound, bound)
    b = jax.random.uniform(kb, (1, fan_out), jnp.float32, -bound, bound)
    return w, b


def init_fp_module_params(key, mlp_channels):
    c_in, c_hidden, c_out = mlp_channels
    k1, k2, k3 = jax.random.split(key, 3)
    w1, b1 = _init_linear(k1, c_in, c_hidden)
    w2, b2 = _init_linear(k2, c_hidden, c_out)
    p = {"w1": w1, "b1": b1, "w2": w2, "b2": b2}
    if c_in != c_out:
        ws, bs = _init_linear(k3, c_in, c_out)
        p["ws"], p["bs"] = ws, bs
    # else: nn.Identity shortcut -> synthesized eye-block weights in the wrapper
    return p


# ---------------------------------------------------------------------------
# Pure-JAX reference (mirrors torch_geometric knn_interpolate + ResMLP + ReLU)
# ---------------------------------------------------------------------------
def _reference_forward(params, k, x_target, pos_target, batch_target,
                       x_source, pos_source, batch_source):
    d2 = jnp.sum((pos_target[:, None, :] - pos_source[None, :, :]) ** 2, axis=-1)
    d2 = jnp.where(batch_target[:, None] == batch_source[None, :], d2, jnp.inf)
    neg_top, idx = jax.lax.top_k(-d2, k)
    dk = -neg_top
    w = 1.0 / jnp.maximum(dk, 1e-16)
    feats = x_source[idx]                                    # (Nt, k, F)
    interp = jnp.sum(w[..., None] * feats, axis=1) / jnp.sum(w, axis=1, keepdims=True)
    x = jnp.concatenate([x_target, interp], axis=1) if x_target is not None else interp
    h = jnp.maximum(x @ params["w1"] + params["b1"], 0.0)
    y = h @ params["w2"] + params["b2"]
    s = (x @ params["ws"] + params["bs"]) if "ws" in params else x
    return jnp.maximum(y + s, 0.0)


# ---------------------------------------------------------------------------
if __name__ == "__main__":
    master_key = jax.random.PRNGKey(0)

    def run_case(name, key, k, n_target, n_source, f_target, f_source, mlp_channels,
                 n_batch=2):
        ks = jax.random.split(key, 5)
        pos_target = jax.random.normal(ks[0], (n_target, 3), jnp.float32)
        pos_source = jax.random.normal(ks[1], (n_source, 3), jnp.float32)
        x_source = jax.random.normal(ks[2], (n_source, f_source), jnp.float32)
        x_target = (jax.random.normal(ks[3], (n_target, f_target), jnp.float32)
                    if f_target > 0 else None)
        batch_target = jnp.minimum(
            jnp.arange(n_target, dtype=jnp.int32) * n_batch // n_target, n_batch - 1)
        batch_source = jnp.minimum(
            jnp.arange(n_source, dtype=jnp.int32) * n_batch // n_source, n_batch - 1)
        params = init_fp_module_params(ks[4], mlp_channels)

        out = fp_module_forward(params, k, x_target, pos_target, batch_target,
                                x_source, pos_source, batch_source)
        out = jax.block_until_ready(out)

        assert out.shape == (n_target, mlp_channels[2]), (name, out.shape)
        assert bool(jnp.all(jnp.isfinite(out))), name

        ref = _reference_forward(params, k, x_target, pos_target, batch_target,
                                 x_source, pos_source, batch_source)
        scale = float(jnp.maximum(jnp.max(jnp.abs(ref)), 1.0))
        err = float(jnp.max(jnp.abs(out - ref)))
        assert err <= 1e-2 * scale, f"{name}: max abs err {err} (scale {scale})"

    k0, k1, k2 = jax.random.split(master_key, 3)
    # A) x_target present, Linear shortcut (c_in != c_out)
    run_case("linear_shortcut", k0, k=3, n_target=16, n_source=8,
             f_target=8, f_source=8, mlp_channels=[16, 32, 8])
    # B) x_target present, Identity shortcut (c_in == c_out); Nt not a multiple of 8
    run_case("identity_shortcut", k1, k=3, n_target=13, n_source=10,
             f_target=8, f_source=8, mlp_channels=[16, 32, 16])
    # C) x_target is None, Linear shortcut
    run_case("no_x_target", k2, k=2, n_target=16, n_source=12,
             f_target=0, f_source=8, mlp_channels=[8, 32, 4])

    print("KERNEL_OK")
</pallas_src>

<mosaic_0001>
module attributes {stable_mosaic.version = 11 : i64} {
  func.func @kernel(%arg0: i32, %arg1: memref<8x5xf32, #tpu.memory_space<vmem>>, %arg2: memref<8x1xi32, #tpu.memory_space<vmem>>, %arg3: memref<8x8xf32, #tpu.memory_space<vmem>>, %arg4: memref<5x8xf32, #tpu.memory_space<vmem>>, %arg5: memref<1x8xi32, #tpu.memory_space<vmem>>, %arg6: memref<8x8xf32, #tpu.memory_space<vmem>>, %arg7: memref<8x32xf32, #tpu.memory_space<vmem>>, %arg8: memref<8x32xf32, #tpu.memory_space<vmem>>, %arg9: memref<1x32xf32, #tpu.memory_space<vmem>>, %arg10: memref<32x128xf32, #tpu.memory_space<vmem>>, %arg11: memref<1x128xf32, #tpu.memory_space<vmem>>, %arg12: memref<8x128xf32, #tpu.memory_space<vmem>>, %arg13: memref<8x128xf32, #tpu.memory_space<vmem>>, %arg14: memref<8x128xf32, #tpu.memory_space<vmem>>) attributes {dimension_semantics = [#tpu.dimension_semantics<parallel>], iteration_bounds = array<i64: 2>, scalar_prefetch = 0 : i64, scratch_operands = 0 : i64, tpu.core_type = #tpu.core_type<tc>, window_params = [{transform_indices = @transform_0, window_bounds = array<i64: 8, 5>}, {transform_indices = @transform_1, window_bounds = array<i64: 8, 1>}, {transform_indices = @transform_2, window_bounds = array<i64: 8, 8>}, {pipeline_mode = #tpu.pipeline_mode<synchronous>, transform_indices = @transform_3, window_bounds = array<i64: 5, 8>}, {pipeline_mode = #tpu.pipeline_mode<synchronous>, transform_indices = @transform_4, window_bounds = array<i64: 1, 8>}, {pipeline_mode = #tpu.pipeline_mode<synchronous>, transform_indices = @transform_5, window_bounds = array<i64: 8, 8>}, {pipeline_mode = #tpu.pipeline_mode<synchronous>, transform_indices = @transform_6, window_bounds = array<i64: 8, 32>}, {pipeline_mode = #tpu.pipeline_mode<synchronous>, transform_indices = @transform_7, window_bounds = array<i64: 8, 32>}, {pipeline_mode = #tpu.pipeline_mode<synchronous>, transform_indices = @transform_8, window_bounds = array<i64: 1, 32>}, {pipeline_mode = #tpu.pipeline_mode<synchronous>, transform_indices = @transform_9, window_bounds = array<i64: 32, 128>}, {pipeline_mode = #tpu.pipeline_mode<synchronous>, transform_indices = @transform_10, window_bounds = array<i64: 1, 128>}, {pipeline_mode = #tpu.pipeline_mode<synchronous>, transform_indices = @transform_11, window_bounds = array<i64: 8, 128>}, {pipeline_mode = #tpu.pipeline_mode<synchronous>, transform_indices = @transform_12, window_bounds = array<i64: 8, 128>}, {transform_indices = @transform_13, window_bounds = array<i64: 8, 128>}]} {
    %c0 = arith.constant 0 : index
    %c0_0 = arith.constant 0 : index
    %0 = vector.load %arg1[%c0, %c0_0] : memref<8x5xf32, #tpu.memory_space<vmem>>, vector<8x5xf32>
    %c0_1 = arith.constant 0 : index
    %c0_2 = arith.constant 0 : index
    %1 = vector.load %arg4[%c0_1, %c0_2] : memref<5x8xf32, #tpu.memory_space<vmem>>, vector<5x8xf32>
    %cst = arith.constant dense<0.000000e+00> : vector<8x8xf32>
    %2 = tpu.matmul %0, %1, %cst {dimension_numbers = #tpu.dot_dimension_numbers<[1], [0], [0], [1], [0, 0, 1, 1], [], []>} : vector<8x5xf32>, vector<5x8xf32>, vector<8x8xf32> -> vector<8x8xf32>
    %c0_3 = arith.constant 0 : index
    %c0_4 = arith.constant 0 : index
    %3 = vector.load %arg2[%c0_3, %c0_4] : memref<8x1xi32, #tpu.memory_space<vmem>>, vector<8x1xi32>
    %c0_5 = arith.constant 0 : index
    %c0_6 = arith.constant 0 : index
    %4 = vector.load %arg5[%c0_5, %c0_6] : memref<1x8xi32, #tpu.memory_space<vmem>>, vector<1x8xi32>
    %5 = vector.broadcast %3 : vector<8x1xi32> to vector<8x8xi32>
    %6 = vector.broadcast %4 : vector<1x8xi32> to vector<8x8xi32>
    %7 = arith.cmpi eq, %5, %6 : vector<8x8xi32>
    %cst_7 = arith.constant 0.000000e+00 : f32
    %8 = vector.broadcast %cst_7 : f32 to vector<8x8xf32>
    %9 = arith.maximumf %2, %8 : vector<8x8xf32>
    %cst_8 = arith.constant 1.000000e+30 : f32
    %10 = vector.broadcast %cst_8 : f32 to vector<8x8xf32>
    %11 = arith.select %7, %9, %10 : vector<8x8xi1>, vector<8x8xf32>
    %cst_9 = arith.constant 0.000000e+00 : f32
    %12 = vector.broadcast %cst_9 : f32 to vector<8x8xf32>
    %cst_10 = arith.constant 0.000000e+00 : f32
    %13 = vector.broadcast %cst_10 : f32 to vector<8x1xf32>
    %cst_11 = arith.constant dense<0x7F800000> : vector<8xf32>
    %14 = vector.multi_reduction <minimumf>, %11, %cst_11 [1] : vector<8x8xf32> to vector<8xf32>
    %15 = vector.shape_cast %14 : vector<8xf32> to vector<8x1xf32>
    %cst_12 = arith.constant 1.000000e+29 : f32
    %16 = vector.broadcast %cst_12 : f32 to vector<8x1xf32>
    %17 = arith.cmpf olt, %15, %16 : vector<8x1xf32>
    %cst_13 = arith.constant -1.000000e+00 : f32
    %18 = vector.broadcast %cst_13 : f32 to vector<8x1xf32>
    %19 = arith.select %17, %15, %18 : vector<8x1xi1>, vector<8x1xf32>
    %20 = vector.broadcast %19 : vector<8x1xf32> to vector<8x8xf32>
    %21 = arith.cmpf ole, %11, %20 : vector<8x8xf32>
    %cst_14 = arith.constant 1.000000e-16 : f32
    %22 = vector.broadcast %cst_14 : f32 to vector<8x1xf32>
    %23 = arith.maximumf %15, %22 : vector<8x1xf32>
    %24 = tpu.reciprocal %23 {approx = true} : vector<8x1xf32> -> vector<8x1xf32>
    %cst_15 = arith.constant 0.000000e+00 : f32
    %25 = vector.broadcast %cst_15 : f32 to vector<8x1xf32>
    %26 = arith.select %17, %24, %25 : vector<8x1xi1>, vector<8x1xf32>
    %27 = vector.shape_cast %26 : vector<8x1xf32> to vector<8x1xf32>
    %28 = vector.broadcast %27 : vector<8x1xf32> to vector<8x8xf32>
    %29 = arith.select %21, %28, %12 : vector<8x8xi1>, vector<8x8xf32>
    %30 = arith.addf %13, %26 : vector<8x1xf32>
    %cst_16 = arith.constant 1.000000e+30 : f32
    %31 = vector.broadcast %cst_16 : f32 to vector<8x8xf32>
    %32 = arith.select %21, %31, %11 : vector<8x8xi1>, vector<8x8xf32>
    %cst_17 = arith.constant dense<0x7F800000> : vector<8xf32>
    %33 = vector.multi_reduction <minimumf>, %32, %cst_17 [1] : vector<8x8xf32> to vector<8xf32>
    %34 = vector.shape_cast %33 : vector<8xf32> to vector<8x1xf32>
    %cst_18 = arith.constant 1.000000e+29 : f32
    %35 = vector.broadcast %cst_18 : f32 to vector<8x1xf32>
    %36 = arith.cmpf olt, %34, %35 : vector<8x1xf32>
    %cst_19 = arith.constant -1.000000e+00 : f32
    %37 = vector.broadcast %cst_19 : f32 to vector<8x1xf32>
    %38 = arith.select %36, %34, %37 : vector<8x1xi1>, vector<8x1xf32>
    %39 = vector.broadcast %38 : vector<8x1xf32> to vector<8x8xf32>
    %40 = arith.cmpf ole, %32, %39 : vector<8x8xf32>
    %cst_20 = arith.constant 1.000000e-16 : f32
    %41 = vector.broadcast %cst_20 : f32 to vector<8x1xf32>
    %42 = arith.maximumf %34, %41 : vector<8x1xf32>
    %43 = tpu.reciprocal %42 {approx = true} : vector<8x1xf32> -> vector<8x1xf32>
    %cst_21 = arith.constant 0.000000e+00 : f32
    %44 = vector.broadcast %cst_21 : f32 to vector<8x1xf32>
    %45 = arith.select %36, %43, %44 : vector<8x1xi1>, vector<8x1xf32>
    %46 = vector.shape_cast %45 : vector<8x1xf32> to vector<8x1xf32>
    %47 = vector.broadcast %46 : vector<8x1xf32> to vector<8x8xf32>
    %48 = arith.select %40, %47, %29 : vector<8x8xi1>, vector<8x8xf32>
    %49 = arith.addf %30, %45 : vector<8x1xf32>
    %cst_22 = arith.constant 1.000000e+30 : f32
    %50 = vector.broadcast %cst_22 : f32 to vector<8x8xf32>
    %51 = arith.select %40, %50, %32 : vector<8x8xi1>, vector<8x8xf32>
    %cst_23 = arith.constant dense<0x7F800000> : vector<8xf32>
    %52 = vector.multi_reduction <minimumf>, %51, %cst_23 [1] : vector<8x8xf32> to vector<8xf32>
    %53 = vector.shape_cast %52 : vector<8xf32> to vector<8x1xf32>
    %cst_24 = arith.constant 1.000000e+29 : f32
    %54 = vector.broadcast %cst_24 : f32 to vector<8x1xf32>
    %55 = arith.cmpf olt, %53, %54 : vector<8x1xf32>
    %cst_25 = arith.constant -1.000000e+00 : f32
    %56 = vector.broadcast %cst_25 : f32 to vector<8x1xf32>
    %57 = arith.select %55, %53, %56 : vector<8x1xi1>, vector<8x1xf32>
    %58 = vector.broadcast %57 : vector<8x1xf32> to vector<8x8xf32>
    %59 = arith.cmpf ole, %51, %58 : vector<8x8xf32>
    %cst_26 = arith.constant 1.000000e-16 : f32
    %60 = vector.broadcast %cst_26 : f32 to vector<8x1xf32>
    %61 = arith.maximumf %53, %60 : vector<8x1xf32>
    %62 = tpu.reciprocal %61 {approx = true} : vector<8x1xf32> -> vector<8x1xf32>
    %cst_27 = arith.constant 0.000000e+00 : f32
    %63 = vector.broadcast %cst_27 : f32 to vector<8x1xf32>
    %64 = arith.select %55, %62, %63 : vector<8x1xi1>, vector<8x1xf32>
    %65 = vector.shape_cast %64 : vector<8x1xf32> to vector<8x1xf32>
    %66 = vector.broadcast %65 : vector<8x1xf32> to vector<8x8xf32>
    %67 = arith.select %59, %66, %48 : vector<8x8xi1>, vector<8x8xf32>
    %68 = arith.addf %49, %64 : vector<8x1xf32>
    %c0_28 = arith.constant 0 : index
    %c0_29 = arith.constant 0 : index
    %69 = vector.load %arg6[%c0_28, %c0_29] : memref<8x8xf32, #tpu.memory_space<vmem>>, vector<8x8xf32>
    %cst_30 = arith.constant dense<0.000000e+00> : vector<8x8xf32>
    %70 = tpu.matmul %67, %69, %cst_30 {dimension_numbers = #tpu.dot_dimension_numbers<[1], [0], [0], [1], [0, 0, 1, 1], [], []>} : vector<8x8xf32>, vector<8x8xf32>, vector<8x8xf32> -> vector<8x8xf32>
    %cst_31 = arith.constant 1.000000e-30 : f32
    %71 = vector.broadcast %cst_31 : f32 to vector<8x1xf32>
    %72 = arith.maximumf %68, %71 : vector<8x1xf32>
    %73 = tpu.reciprocal %72 : vector<8x1xf32> -> vector<8x1xf32>
    %74 = vector.broadcast %73 : vector<8x1xf32> to vector<8x8xf32>
    %75 = arith.mulf %70, %74 : vector<8x8xf32>
    %c0_32 = arith.constant 0 : index
    %c0_33 = arith.constant 0 : index
    %76 = vector.load %arg7[%c0_32, %c0_33] : memref<8x32xf32, #tpu.memory_space<vmem>>, vector<8x32xf32>
    %cst_34 = arith.constant dense<0.000000e+00> : vector<8x32xf32>
    %77 = tpu.matmul %75, %76, %cst_34 {dimension_numbers = #tpu.dot_dimension_numbers<[1], [0], [0], [1], [0, 0, 1, 1], [], []>} : vector<8x8xf32>, vector<8x32xf32>, vector<8x32xf32> -> vector<8x32xf32>
    %c0_35 = arith.constant 0 : index
    %c0_36 = arith.constant 0 : index
    %78 = vector.load %arg12[%c0_35, %c0_36] : memref<8x128xf32, #tpu.memory_space<vmem>>, vector<8x128xf32>
    %cst_37 = arith.constant dense<0.000000e+00> : vector<8x128xf32>
    %79 = tpu.matmul %75, %78, %cst_37 {dimension_numbers = #tpu.dot_dimension_numbers<[1], [0], [0], [1], [0, 0, 1, 1], [], []>} : vector<8x8xf32>, vector<8x128xf32>, vector<8x128xf32> -> vector<8x128xf32>
    %c0_38 = arith.constant 0 : index
    %c0_39 = arith.constant 0 : index
    %80 = vector.load %arg3[%c0_38, %c0_39] : memref<8x8xf32, #tpu.memory_space<vmem>>, vector<8x8xf32>
    %c0_40 = arith.constant 0 : index
    %c0_41 = arith.constant 0 : index
    %81 = vector.load %arg8[%c0_40, %c0_41] : memref<8x32xf32, #tpu.memory_space<vmem>>, vector<8x32xf32>
    %cst_42 = arith.constant dense<0.000000e+00> : vector<8x32xf32>
    %82 = tpu.matmul %80, %81, %cst_42 {dimension_numbers = #tpu.dot_dimension_numbers<[1], [0], [0], [1], [0, 0, 1, 1], [], []>} : vector<8x8xf32>, vector<8x32xf32>, vector<8x32xf32> -> vector<8x32xf32>
    %83 = arith.addf %77, %82 : vector<8x32xf32>
    %c0_43 = arith.constant 0 : index
    %c0_44 = arith.constant 0 : index
    %84 = vector.load %arg13[%c0_43, %c0_44] : memref<8x128xf32, #tpu.memory_space<vmem>>, vector<8x128xf32>
    %cst_45 = arith.constant dense<0.000000e+00> : vector<8x128xf32>
    %85 = tpu.matmul %80, %84, %cst_45 {dimension_numbers = #tpu.dot_dimension_numbers<[1], [0], [0], [1], [0, 0, 1, 1], [], []>} : vector<8x8xf32>, vector<8x128xf32>, vector<8x128xf32> -> vector<8x128xf32>
    %86 = arith.addf %79, %85 : vector<8x128xf32>
    %c0_46 = arith.constant 0 : index
    %c0_47 = arith.constant 0 : index
    %87 = vector.load %arg9[%c0_46, %c0_47] : memref<1x32xf32, #tpu.memory_space<vmem>>, vector<1x32xf32>
    %88 = vector.broadcast %87 : vector<1x32xf32> to vector<8x32xf32>
    %89 = arith.addf %83, %88 : vector<8x32xf32>
    %cst_48 = arith.constant 0.000000e+00 : f32
    %90 = vector.broadcast %cst_48 : f32 to vector<8x32xf32>
    %91 = arith.maximumf %89, %90 : vector<8x32xf32>
    %c0_49 = arith.constant 0 : index
    %c0_50 = arith.constant 0 : index
    %92 = vector.load %arg10[%c0_49, %c0_50] : memref<32x128xf32, #tpu.memory_space<vmem>>, vector<32x128xf32>
    %cst_51 = arith.constant dense<0.000000e+00> : vector<8x128xf32>
    %93 = tpu.matmul %91, %92, %cst_51 {dimension_numbers = #tpu.dot_dimension_numbers<[1], [0], [0], [1], [0, 0, 1, 1], [], []>} : vector<8x32xf32>, vector<32x128xf32>, vector<8x128xf32> -> vector<8x128xf32>
    %c0_52 = arith.constant 0 : index
    %c0_53 = arith.constant 0 : index
    %94 = vector.load %arg11[%c0_52, %c0_53] : memref<1x128xf32, #tpu.memory_space<vmem>>, vector<1x128xf32>
    %95 = vector.broadcast %94 : vector<1x128xf32> to vector<8x128xf32>
    %96 = arith.addf %93, %95 : vector<8x128xf32>
    %97 = arith.addf %96, %86 : vector<8x128xf32>
    %cst_54 = arith.constant 0.000000e+00 : f32
    %98 = vector.broadcast %cst_54 : f32 to vector<8x128xf32>
    %99 = arith.maximumf %97, %98 : vector<8x128xf32>
    %c0_55 = arith.constant 0 : index
    %c0_56 = arith.constant 0 : index
    %100 = vector.load %arg14[%c0_55, %c0_56] : memref<8x128xf32, #tpu.memory_space<vmem>>, vector<8x128xf32>
    tpu.vector_store %arg14[%c0_55, %c0_56], %99 {strides = array<i32>} : memref<8x128xf32, #tpu.memory_space<vmem>>, vector<8x128xf32>,
    return
  }
  func.func @transform_0(%arg0: i32) -> (i32, i32) {
    %c0_i32 = arith.constant 0 : i32
    %c0_i32_0 = arith.constant 0 : i32
    return %arg0, %c0_i32 : i32, i32
  }
  func.func @transform_1(%arg0: i32) -> (i32, i32) {
    %c0_i32 = arith.constant 0 : i32
    %c0_i32_0 = arith.constant 0 : i32
    return %arg0, %c0_i32 : i32, i32
  }
  func.func @transform_2(%arg0: i32) -> (i32, i32) {
    %c0_i32 = arith.constant 0 : i32
    %c0_i32_0 = arith.constant 0 : i32
    return %arg0, %c0_i32 : i32, i32
  }
  func.func @transform_3(%arg0: i32) -> (i32, i32) {
    %c0_i32 = arith.constant 0 : i32
    %c0_i32_0 = arith.constant 0 : i32
    %c0_i32_1 = arith.constant 0 : i32
    return %c0_i32, %c0_i32_0 : i32, i32
  }
  func.func @transform_4(%arg0: i32) -> (i32, i32) {
    %c0_i32 = arith.constant 0 : i32
    %c0_i32_0 = arith.constant 0 : i32
    %c0_i32_1 = arith.constant 0 : i32
    return %c0_i32, %c0_i32_0 : i32, i32
  }
  func.func @transform_5(%arg0: i32) -> (i32, i32) {
    %c0_i32 = arith.constant 0 : i32
    %c0_i32_0 = arith.constant 0 : i32
    %c0_i32_1 = arith.constant 0 : i32
    return %c0_i32, %c0_i32_0 : i32, i32
  }
  func.func @transform_6(%arg0: i32) -> (i32, i32) {
    %c0_i32 = arith.constant 0 : i32
    %c0_i32_0 = arith.constant 0 : i32
    %c0_i32_1 = arith.constant 0 : i32
    return %c0_i32, %c0_i32_0 : i32, i32
  }
  func.func @transform_7(%arg0: i32) -> (i32, i32) {
    %c0_i32 = arith.constant 0 : i32
    %c0_i32_0 = arith.constant 0 : i32
    %c0_i32_1 = arith.constant 0 : i32
    return %c0_i32, %c0_i32_0 : i32, i32
  }
  func.func @transform_8(%arg0: i32) -> (i32, i32) {
    %c0_i32 = arith.constant 0 : i32
    %c0_i32_0 = arith.constant 0 : i32
    %c0_i32_1 = arith.constant 0 : i32
    return %c0_i32, %c0_i32_0 : i32, i32
  }
  func.func @transform_9(%arg0: i32) -> (i32, i32) {
    %c0_i32 = arith.constant 0 : i32
    %c0_i32_0 = arith.constant 0 : i32
    %c0_i32_1 = arith.constant 0 : i32
    return %c0_i32, %c0_i32_0 : i32, i32
  }
  func.func @transform_10(%arg0: i32) -> (i32, i32) {
    %c0_i32 = arith.constant 0 : i32
    %c0_i32_0 = arith.constant 0 : i32
    %c0_i32_1 = arith.constant 0 : i32
    return %c0_i32, %c0_i32_0 : i32, i32
  }
  func.func @transform_11(%arg0: i32) -> (i32, i32) {
    %c0_i32 = arith.constant 0 : i32
    %c0_i32_0 = arith.constant 0 : i32
    %c0_i32_1 = arith.constant 0 : i32
    return %c0_i32, %c0_i32_0 : i32, i32
  }
  func.func @transform_12(%arg0: i32) -> (i32, i32) {
    %c0_i32 = arith.constant 0 : i32
    %c0_i32_0 = arith.constant 0 : i32
    %c0_i32_1 = arith.constant 0 : i32
    return %c0_i32, %c0_i32_0 : i32, i32
  }
  func.func @transform_13(%arg0: i32) -> (i32, i32) {
    %c0_i32 = arith.constant 0 : i32
    %c0_i32_0 = arith.constant 0 : i32
    return %arg0, %c0_i32 : i32, i32
  }
}

</mosaic_0001>

<bundles_post_ra>
// kernel: tpu_custom_call.1
= control target key start
LH: loop header
LB: loop body
LE: loop exit
PB: predicated region body
PF: predicated region fallthrough
CT: control target
= control target key end

     0   :  { %s1769_s0 = inlined_call_operand.vmem [shape: f32[16,5], index: 0, kind: input, shape index: {}]   ;;  %s1770_s1 = inlined_call_operand.vmem [shape: s32[16,1], index: 1, kind: input, shape index: {}]   ;;  %s1771_s2 = inlined_call_operand.vmem [shape: f32[16,8], index: 2, kind: input, shape index: {}]   ;;  %s1772_s3 = inlined_call_operand.vmem [shape: f32[5,8], index: 3, kind: input, shape index: {}]   ;;  %s1773_s4 = inlined_call_operand.hbm [shape: s32[1,8], index: 4, kind: input, shape index: {}]   ;;  %s1774_s5 = inlined_call_operand.vmem [shape: f32[8,8], index: 5, kind: input, shape index: {}]   ;;  %s1775_s6 = inlined_call_operand.vmem [shape: f32[8,32], index: 6, kind: input, shape index: {}]   ;;  %s1776_s7 = inlined_call_operand.vmem [shape: f32[8,32], index: 7, kind: input, shape index: {}]   ;;  %s1777_s8 = inlined_call_operand.vmem [shape: f32[1,32], index: 8, kind: input, shape index: {}]   ;;  %s1778_s9 = inlined_call_operand.vmem [shape: f32[32,128], index: 9, kind: input, shape index: {}]   ;;  %s1779_s10 = inlined_call_operand.vmem [shape: f32[1,128], index: 10, kind: input, shape index: {}]   ;;  %s1780_s11 = inlined_call_operand.vmem [shape: f32[8,128], index: 11, kind: input, shape index: {}]   ;;  %s1781_s12 = inlined_call_operand.hbm [shape: f32[8,128], index: 12, kind: input, shape index: {}]   ;;  %s1782_s13 = inlined_call_operand.hbm [shape: f32[16,128], index: 13, kind: output, shape index: {}]  }
   0x1   :  { %1786 = sst [smem:[#allocation12_spill]] %s1769_s0 }
   0x2   :  { %1787 = sst [smem:[#allocation13_spill]] %s1770_s1 }
   0x3   :  { %1788 = sst [smem:[#allocation14_spill]] %s1773_s4 }
   0x4   :  { %18 = vsyncpa [#allocation3], 0 }
   0x5   :  { %19 = vsyncpa [#allocation6], 0 }
   0x6   :  { %20 = vsyncpa [#allocation4], 0 }
   0x7   :  { %22 = vsyncpa [#allocation4 + $0x1], 0  ;;  %s1563_s25 = smov 0   ;;  %s1565_s26 = smov 0  }
   0x8   :  { %s1567_s27 = smov 0   ;;  %s1569_s28 = smov 0  }
   0x9 LB: > { %s1584_s29 = sadd.s32 4294967295, %s1485_s28   ;;  %s1208_s30 = sadd.s32 4294967294, %s1485_s28   ;;  %s1485_s28 = sphi %s1569_s28, %s1808_s28   ;;  %s1481_s27 = sphi %s1567_s27, %s1807_s27   ;;  %s1477_s26 = sphi %s1565_s26, %s1806_s26   ;;  %s1473_s25 = sphi %s1563_s25, %s1805_s25  }
   0xa   : > { %s1588_s14 = sadd.s32 1, %s1485_s28   ;;  %s323_s15 = sadd.s32 1, %s1481_s27 }
   0xb   : > { %s320_s16 = ssub.s32 %s1485_s28, %s1588_s14  ;;  %p333_p0 = scmp.ne.s32.totalorder %s1481_s27, %s1477_s26 }
   0xc   : > { %p321_p1 = scmp.eq.s32.totalorder %s320_s16, 0  ;;  %p334_p2 = scmp.eq.s32.totalorder %s1584_s29, 1 }
   0xd   : > { %p339_p3 = scmp.ne.s32.totalorder %s1477_s26, %s1473_s25  ;;  %p340_p4 = scmp.eq.s32.totalorder %s1208_s30, 1 }
   0xe   : > { %s1599_s17 = scalar_select %p321_p1, %s1481_s27, %s323_s15  }
   0xf   : > { %p1601_p5 = por %p334_p2, %p333_p0  ;;  %p1605_p6 = por %p340_p4, %p339_p3 }
  0x10   : > { %1789 = sst [smem:[#allocation11_spill]] %s1599_s17  ;;  %p1209_p7 = scmp.ge.s32.totalorder %s1485_s28, 1 }
  0x11   : > { %s1790_s18 = scalar_select %p1601_p5, 1, 0 }
  0x12   : > { %s1791_s19 = scalar_select %p1605_p6, 1, 0 }
  0x13   : > { %p347_p8 = scmp.lt.s32.totalorder %s1485_s28, 3  ;;  %p1783_p9 = scmp.eq.s32.totalorder %s1584_s29, 0 }
  0x14   : > { %s1487_s21 = smov [#allocation2]   ;;  %s1488_s23 = smov [#allocation5]  }
  0x15   : > { %p1612_p10 = pnand %p1209_p7, %p347_p8  ;;  %s363_s22 = sshll.u32 %s1487_s21, 4  ;;  %s364_s22 = int_to_ptr.vmem [resolvable:$true] %s363_s22 }
  0x16   : > { %s395_s24 = sshll.u32 %s1488_s23, 4  ;;  %s1376_s15 = scalar_lea.vmem %s364_s22, 16  ;;  %s396_s24 = int_to_ptr.vmem [resolvable:$true] %s395_s24 }
  0x17   : > { %s1792_s20 = scalar_select %p1612_p10, 1, 0 }
  0x18   : > { %p1303_p11 = pneg %p1612_p10  ;;  %p1377_p0 = scmp.ne.s32.totalorder %s364_s22, %s1376_s15 }
  0x19   : > { %s1383_s16 = scalar_lea.vmem %s364_s22, 32  ;;  %p1384_p3 = scmp.lt.s32.totalorder %s364_s22, %s364_s22 }
  0x1a   : > { %p1620_p12 = pnand %p1783_p9, %p1303_p11  ;;  %p1385_p4 = scmp.lt.s32.totalorder %s1383_s16, %s1376_s15 }
  0x1c   : > { %p1367_p13 = pneg %p1620_p12  ;;  %p1386_p7 = por %p1385_p4, %p1384_p3 }
  0x1e   : > { %p1379_p1 = pnand %p1377_p0, %p1367_p13 }
  0x20   : > { %p1380_p2 = pneg %p1379_p1 }
  0x22   : > { %p1387_p8 = pnand %p1386_p7, %p1380_p2 }
  0x24   : > { %1390 = shalt.err (!%p1387_p8)
}
  0x25   : > { %s1794_s4 = sld [smem:[#allocation14_spill]]  ;;  %s1402_s17 = scalar_lea.vmem %s396_s24, 128 }
  0x26   : > { %p1403_p11 = scmp.ne.s32.totalorder %s396_s24, %s1402_s17  ;;  %p1410_p1 = scmp.lt.s32.totalorder %s396_s24, %s396_s24 }
  0x27   : > { %p1411_p6 = scmp.lt.s32.totalorder %s1402_s17, %s1402_s17 }
  0x28   : > { %p1405_p9 = pnand %p1403_p11, %p1367_p13 }
  0x29   : > { %p1412_p5 = por %p1411_p6, %p1410_p1 }
  0x2a   : > { %p1406_p0 = pneg %p1405_p9 }
  0x2b   : > { %1306 = dma.hbm_to_vmem [thread:$0]  (!%p1620_p12), %s1794_s4, 16, %s364_s22, [#allocation3]  }
  0x2c   : > { %p1413_p10 = pnand %p1412_p5, %p1406_p0 }
  0x2e   : > { %1416 = shalt.err (!%p1413_p10)
}
  0x2f   : > { %1309 = dma.hbm_to_vmem [thread:$0]  (!%p1620_p12), %s1781_s12, 128, %s396_s24, [#allocation6]  }
  0x30   : > { %p1795_p2 = scmp.ne.s32.totalorder %s1792_s20, 0 }
  0x31   : > { %p1796_p3 = scmp.eq.s32.totalorder (!%p1795_p2), %s1584_s29, 0 }
  0x32   : > { %429 = sbr.rel (%p1795_p2) target bundleno = 1312 (0x520), region = 72 }
  0x37   : > { %1460 = dma.done.wait (%p1796_p3), [#allocation3], 16   ;;  %p1797_p13 = pmov %p1796_p3 }
  0x38   : > { %p1798_p9 = pmov %p1796_p3 }
  0x39   : > { %1462 = vsyncadd (%p1797_p13), [#allocation3], 4294967280 }
  0x3a   : > { %1464 = dma.done.wait (%p1798_p9), [#allocation6], 128   ;;  %p1799_p5 = pmov %p1796_p3 }
  0x3b   : > { %p484_p6 = scmp.lt.s32.totalorder %s1584_s29, 1  ;;  %v1489_v0 = vmov 0.0   ;;  %vm1490_vm0 = vmmov 0   ;;  %v1491_v1 = vmov 0   ;;  %vm502_vm1 = vcmask 1044480   ;;  %s1800_s0 = sld [smem:[#allocation12_spill]] }
  0x3c   : > { %1466 = vsyncadd (%p1799_p5), [#allocation6], 4294967168  ;;  %1252 = vmatprep.subr.mxu1 %v1489_v0  ;;  %1254 = vmatprep.mubr.msk.f32.mxu1 %vm1490_vm0, %v1489_v0  ;;  %s1801_s1 = sld [smem:[#allocation13_spill]]  ;;  %vm498_vm2 = vcmask 39936   ;;  %v497_v2 = vld [vmem:[%s1772_s3] sm:$0x1f] }
  0x3d   : > { %s485_s17 = scalar_select %p484_p6, %s1584_s29, 1  ;;  %1356 = vset.pattern.permute.xlu0 %v1491_v1  ;;  %1262 = vmatprep.subr.mxu0 %v1489_v0  ;;  %v1222_v5 = vld [vmem:[#allocation2] ss:$0 sm:$0xff]  ;;  %vm588_vm4 = vcmask 64512   ;;  %v851_v40 = vld [vmem:[#allocation5] sm:$0xff]  ;;  %v1004_v48 = vld [vmem:[%s1778_s9 + $0x18] sm:$0xff] }
  0x3e   : > { %1264 = vmatprep.mubr.msk.f32.mxu0 %vm1490_vm0, %v1489_v0  ;;  %1253 = vmatpush3.msk.msra.mxu1 %vm502_vm1, %v497_v2  ;;  %v624_v28 = vld [vmem:[%s1774_s5] sm:$0xff]  ;;  %v1003_v50 = vld [vmem:[%s1778_s9 + $0x10] sm:$0xff]  ;;  %v1002_v51 = vld [vmem:[%s1778_s9 + $0x8] sm:$0xff]  ;;  %vm1012_vm11 = vcmask 261120   ;;  %s1232_s21 = sshll.u32 %s1584_s29, 7  ;;  %p1802_p12 = scmp.ne.s32.totalorder %s1790_s18, 0 }
  0x3f   : > { %s1660_s20 = sshll.u32 %s485_s17, 3  ;;  %1257 = vmatprep.subr.mxu1 %v1489_v0  ;;  %v701_v35 = vld [vmem:[%s1775_s6] sm:$0xff]  ;;  %s481_s17 = sand.u32 1, %s1477_s26  }
  0x40   : > { %v704_v38 = vld [vmem:[%s1776_s7] sm:$0xff]  ;;  %s495_s16 = scalar_lea.vmem %s1771_s2, %s1660_s20  ;;  %s1216_s22 = sshll.u32 %s481_s17, 3 }
  0x41   : > { %s487_s30 = scalar_lea.vmem %s1800_s0, %s1660_s20  ;;  %1263 = vmatpush3.msra.mxu0 %v704_v38  ;;  %v703_v39 = vld [vmem:[%s495_s16] sm:$0xff]  ;;  %s483_s23 = scalar_lea.vmem [#allocation7], %s1216_s22 }
  0x42   : > { %s491_s15 = scalar_lea.vmem %s1801_s1, %s1660_s20  ;;  %v496_v3 = vld [vmem:[%s487_s30] sm:$0xff]  ;;  %1265 = vmatmul.mubr.msk.f32.vlgmr.msra.gmra.mxu0 %vm588_vm4, %v703_v39  ;;  %1272 = vmatprep.subr.mxu0 %v1489_v0  ;;  %s1101_s4 = scalar_lea.hbm %s1782_s13, %s1232_s21 }
  0x43   : > { %v576_v4 = vld [vmem:[%s491_s15] sm:$0xff]  ;;  %1255 = vmatmul.mubr.msk.f32.vlgmr.msra.gmra.mxu1 %vm498_vm2, %v496_v3  ;;  %1274 = vmatprep.mubr.msk.f32.mxu0 %vm1490_vm0, %v1489_v0  ;;  %s1103_s15 = sshll.u32 %s483_s23, 4  ;;  %s1090_s0 = scalar_lea.sflag [#allocation4], %s481_s17  ;;  %s1104_s15 = int_to_ptr.vmem [resolvable:$true] %s1103_s15 }
  0x44   : > { %579 = vperm.xlu0 %1356, %v576_v4   ;;  %1259 = vmatprep.mubr.msk.f32.mxu1 %vm1490_vm0, %v1489_v0  ;;  %v702_v45 = vld [vmem:[%s1780_s11] sm:$0xff]  ;;  %s1417_s1 = scalar_lea.vmem %s1104_s15, 128  ;;  %s1492_s24 = smov [#allocation7]  }
  0x45   : > { %1258 = vmatpush3.msra.mxu1 %v624_v28  ;;  %1273 = vmatpush3.msra.mxu0 %v851_v40  ;;  %v1001_v53 = vld [vmem:[%s1778_s9] sm:$0xff]  ;;  %p1418_p10 = scmp.ne.s32.totalorder %s1104_s15, %s1417_s1  ;;  %s1421_s30 = sshll.u32 %s1492_s24, 4  ;;  %s1422_s30 = int_to_ptr.vmem [resolvable:$false] %s1421_s30 }
  0x46   : > { %1267 = vmatprep.subr.mxu1 %v1489_v0  ;;  %1275 = vmatmul.mubr.msk.f32.vlgmr.msra.gmra.mxu0 %vm588_vm4, %v703_v39  ;;  %v1228_v56 = vld [vmem:[%s1777_s8] ss:$0 sm:$0xff]  ;;  %s1423_s29 = scalar_lea.vmem %s1422_s30, 256  ;;  %p1424_p8 = scmp.lt.s32.totalorder %s1104_s15, %s1422_s30 }
  0x47   : > { %1282 = vmatprep.subr.mxu0 %v1489_v0  ;;  %1290 = vmatprep.mubr.msk.f32.mxu0 %vm1490_vm0, %v1489_v0  ;;  %v1229_v63 = vld [vmem:[%s1779_s10] ss:$0 sm:$0xff]  ;;  %p1419_p4 = pnand %p1418_p10, %p1802_p12  ;;  %p1425_p11 = scmp.lt.s32.totalorder %s1423_s29, %s1417_s1 }
  0x48   : > { %1283 = vmatpush3.msra.mxu0 %v1004_v48 }
  0x49   : > { %1284 = vmatprep.subr.mxu0 %v1489_v0  ;;  %p1420_p7 = pneg %p1419_p4  ;;  %p1426_p0 = por %p1425_p11, %p1424_p8 }
  0x4a   : > { %1285 = vmatpush3.msra.mxu0 %v1003_v50 }
  0x4b   : > { %1286 = vmatprep.subr.mxu0 %v1489_v0  ;;  %p1427_p1 = pnand %p1426_p0, %p1420_p7 }
  0x4c   : > { %1287 = vmatpush3.msra.mxu0 %v1002_v51 }
  0x4d   : > { %1288 = vmatprep.subr.mxu0 %v1489_v0 }
  0x4e   : > { %1289 = vmatpush3.msra.mxu0 %v1001_v53 }
  0xbf   : > { %v580_v6 = vpop.permute.xlu0 %579 }
  0xc0   : > { %vm585_vm3 = vcmp.eq.s32.totalorder %v580_v6, %v1222_v5 }
 0x102   : > { %v774_v47 = vpop.f32.mrf.mxu0 }
 0x103   : > { %v572_v7 = vpop.f32.mrf.mxu1 }
 0x104   : > { %v586_v8 = vmax.f32 %v572_v7, 0.0  ;;  %v1266_v49 = vpop.f32.mrf.mxu0 }
 0x105   : > { %v1256_v9 = vpop.f32.mrf.mxu1 }
 0x106   : > { %v587_v10 = vsel %vm585_vm3, %v586_v8, 1e+30  ;;  %v918_v52 = vpop.f32.mrf.mxu0 }
 0x107   : > { %v589_v11 = vsel %vm588_vm4, %v587_v10, inf }
 0x108   : > { %590 = vmin.xlane.f32.xlu0 %v589_v11  ;;  %v1276_v54 = vpop.f32.mrf.mxu0 }
 0x191   : > { %v591_v12 = vpop.xlane.xlu0 %590 }
 0x192   : > { %vm592_vm5 = vcmp.lt.f32.partialorder %v591_v12, 1e+29  ;;  %v595_v13 = vmax.f32 %v591_v12, 1e-16 }
 0x193   : > { %v593_v14 = vsel %vm592_vm5, %v591_v12, -1.0 }
 0x194   : > { %vm594_vm6 = vcmp.le.f32.partialorder %v587_v10, %v593_v14  ;;  %1357 = vrcp.f32 %v595_v13 }
 0x195   : > { %v600_v15 = vsel %vm594_vm6, 1e+30, %v587_v10 }
 0x196   : > { %v601_v16 = vsel %vm588_vm4, %v600_v15, inf }
 0x197   : > { %602 = vmin.xlane.f32.xlu1 %v601_v16 }
 0x1a1   : > { %v1358_v17 = vpop.eup %1357 }
 0x1a2   : > { %v597_v18 = vsel %vm592_vm5, %v1358_v17, 0.0 }
 0x1a3   : > { %v598_v25 = vsel %vm594_vm6, %v597_v18, 0.0 }
 0x220   : > { %v603_v19 = vpop.xlane.xlu1 %602 }
 0x221   : > { %vm604_vm7 = vcmp.lt.f32.partialorder %v603_v19, 1e+29  ;;  %v607_v20 = vmax.f32 %v603_v19, 1e-16 }
 0x222   : > { %v605_v21 = vsel %vm604_vm7, %v603_v19, -1.0 }
 0x223   : > { %1359 = vrcp.f32 %v607_v20  ;;  %vm606_vm8 = vcmp.le.f32.partialorder %v600_v15, %v605_v21 }
 0x224   : > { %v612_v22 = vsel %vm606_vm8, 1e+30, %v600_v15 }
 0x225   : > { %v613_v23 = vsel %vm588_vm4, %v612_v22, inf }
 0x226   : > { %614 = vmin.xlane.f32.xlu1 %v613_v23 }
 0x230   : > { %v1360_v24 = vpop.eup %1359 }
 0x231   : > { %v609_v26 = vsel %vm604_vm7, %v1360_v24, 0.0 }
 0x232   : > { %v610_v27 = vsel %vm606_vm8, %v609_v26, %v598_v25  ;;  %v611_v33 = vadd.f32 %v609_v26, %v597_v18 }
 0x2af   : > { %v615_v29 = vpop.xlane.xlu1 %614 }
 0x2b0   : > { %v619_v30 = vmax.f32 %v615_v29, 1e-16  ;;  %vm616_vm9 = vcmp.lt.f32.partialorder %v615_v29, 1e+29 }
 0x2b1   : > { %v617_v31 = vsel %vm616_vm9, %v615_v29, -1.0 }
 0x2b2   : > { %1361 = vrcp.f32 %v619_v30  ;;  %vm618_vm10 = vcmp.le.f32.partialorder %v612_v22, %v617_v31 }
 0x2bf   : > { %v1362_v32 = vpop.eup %1361 }
 0x2c0   : > { %v621_v34 = vsel %vm616_vm9, %v1362_v32, 0.0 }
 0x2c1   : > { %v622_v36 = vsel %vm618_vm10, %v621_v34, %v610_v27  ;;  %v623_v37 = vadd.f32 %v621_v34, %v611_v33 }
 0x2c2   : > { %1260 = vmatmul.mubr.msk.f32.vlgmr.msra.gmra.mxu1 %vm588_vm4, %v622_v36 }
 0x2c3   : > { %1268 = vmatpush3.msra.mxu1 %v701_v35  ;;  %1269 = vmatprep.mubr.msk.f32.mxu1 %vm1490_vm0, %v1489_v0  ;;  %v698_v41 = vmax.f32 %v623_v37, 1e-30 }
 0x2c4   : > { %1277 = vmatprep.subr.mxu1 %v1489_v0 }
 0x2c5   : > { %1363 = vrcp.f32 %v698_v41 }
 0x2d2   : > { %v1364_v42 = vpop.eup %1363 }
 0x382   : > { %v694_v43 = vpop.f32.mrf.mxu1 }
 0x383   : > { %v700_v44 = vmul.f32 %v1364_v42, %v694_v43 }
 0x384   : > { %v1261_v46 = vpop.f32.mrf.mxu1 }
 0x385   : > { %1270 = vmatmul.mubr.msk.f32.vlgmr.msra.gmra.mxu1 %vm588_vm4, %v700_v44 }
 0x386   : > { %1278 = vmatpush3.msra.mxu1 %v702_v45  ;;  %1279 = vmatprep.mubr.msk.f32.mxu1 %vm1490_vm0, %v1489_v0 }
 0x389   : > { %1280 = vmatmul.mubr.msk.f32.vlgmr.msra.gmra.mxu1 %vm588_vm4, %v700_v44 }
 0x445   : > { %v847_v55 = vpop.f32.mrf.mxu1 }
 0x446   : > { %v848_v57 = vadd.f32 %v847_v55, %v774_v47 }
 0x447   : > { %v1271_v58 = vpop.f32.mrf.mxu1 }
 0x448   : > { %v999_v59 = vadd.f32 %v1228_v56, %v848_v57 }
 0x449   : > { %v988_v60 = vpop.f32.mrf.mxu1 }
 0x44a   : > { %v1000_v61 = vmax.f32 %v999_v59, 0.0  ;;  %v989_v1 = vadd.f32 %v988_v60, %v918_v52 }
 0x44b   : > { %v1281_v62 = vpop.f32.mrf.mxu1 }
 0x44c   : > { %1291 = vmatmul.mubr.msk.f32.vlgmr.msra.gmra.mxu0 %vm1012_vm11, %v1000_v61 }
 0x50c   : > { %v1082_v0 = vpop.f32.mrf.mxu0 }
 0x50d   : > { %v1083_v2 = vadd.f32 %v1229_v63, %v1082_v0 }
 0x50e   : > { %v1292_v3 = vpop.f32.mrf.mxu0 }
 0x50f   : > { %v1086_v4 = vadd.f32 %v1083_v2, %v989_v1 }
 0x511   : > { %v1087_v5 = vmax.f32 %v1086_v4, 0.0 }
 0x513   : > { %1088 = vst [vmem:[%s483_s23] sm:$0xff] %v1087_v5 }
 0x514   : > { %1430 = shalt.err (!%p1427_p1)
}
 0x515   : > { %s1431_s22 = scalar_lea.hbm %s1101_s4, 128  ;;  %s1435_s23 = scalar_lea.hbm %s1782_s13, 256 }
 0x516   : > { %p1432_p2 = scmp.ne.s32.totalorder %s1101_s4, %s1431_s22  ;;  %p1436_p9 = scmp.lt.s32.totalorder %s1101_s4, %s1782_s13 }
 0x517   : > { %p1437_p5 = scmp.lt.s32.totalorder %s1435_s23, %s1431_s22 }
 0x518   : > { %p1433_p3 = pnand %p1432_p2, %p1802_p12 }
 0x519   : > { %p1438_p6 = por %p1437_p5, %p1436_p9 }
 0x51a   : > { %p1434_p13 = pneg %p1433_p3 }
 0x51c   : > { %p1439_p10 = pnand %p1438_p6, %p1434_p13 }
 0x51e   : > { %1442 = shalt.err (!%p1439_p10)
}
 0x51f   : > { %1301 = dma.vmem_to_hbm [thread:$0]  (%p1802_p12), %s1104_s15, 128, %s1101_s4, %s1090_s0  }
 0x520 PF: > { %p1318_p4 = scmp.ge.s32.totalorder %s1485_s28, 2  ;;  %s1115_s1 = sand.u32 1, %s1473_s25  }
 0x521   : > { %p1803_p7 = scmp.ne.s32.totalorder %s1791_s19, 0  ;;  %s1116_s24 = scalar_lea.sflag [#allocation4], %s1115_s1 }
 0x523   : > { %p1311_p8 = pnand %p1318_p4, %p1803_p7 }
 0x525   : > { %p1312_p11 = pneg %p1311_p8 }
 0x527   : > { %1468 = dma.done.wait (%p1312_p11), %s1116_s24, 128  }
 0x528   : > { %1470 = vsyncadd (%p1312_p11), %s1116_s24, 4294967168  ;;  %s1804_s30 = sld [smem:[#allocation11_spill]]  ;;  %p25_p0 = scmp.ge.s32.totalorder %s1588_s14, 4  }
 0x529   : > { %s1805_s25 = smov %s1477_s26  ;;  %s1806_s26 = smov %s1481_s27 }
 0x52a   : > { %s1808_s28 = smov %s1588_s14  ;;  %27 = sbr.rel (!%p25_p0) target bundleno = 9 (0x9), region = 122 }
 0x52e   : > { %s1807_s27 = smov %s1804_s30 }
 0x52f   :  { %1121 = vsyncpa [#allocation3], 1 }
 0x530   :  { %1123 = vsyncpa [#allocation3 + $0x1], 1 }
 0x531   :  { %1124 = vsyncpa [#allocation6], 1 }
 0x532   :  { %1125 = vsyncpa [#allocation4], 1 }
 0x533   :  { %1127 = vsyncpa [#allocation4 + $0x1], 1 }

</bundles_post_ra>
